<compile_context>
chip_gen: v5e
topology: v5e:2x2
jax: 0.10.0
libtpu: 0.0.40
codegen_flags: <defaults>
</compile_context>

<pallas_src>
import functools
import math

import jax
import jax.numpy as jnp
from jax.experimental import pallas as pl
from jax.experimental.pallas import tpu as pltpu

# Make the pure-JAX reference use full f32 matmuls so it matches the kernel's
# f32 MXU accumulation.
jax.config.update("jax_default_matmul_precision", "highest")


def _sigmoid(z):
    # Explicit form (exp + divide) — guaranteed to lower on the TPU EUP/VPU.
    return 1.0 / (1.0 + jnp.exp(-z))


def _lstm_moo_kernel(
    # inputs
    x_ref, h0_ref, c0_ref,
    w_ih_ref, w_hh_ref, b_lstm_ref,
    wg_ref, bg_ref, we_ref, be_ref,
    # outputs
    o_ref, h_n_ref, c_n_ref,
    # scratch (recurrent state, persists across the time grid axis)
    h_scr, c_scr,
    *, hidden_size, num_experts, num_classes,
):
    t = pl.program_id(1)
    H, K, C = hidden_size, num_experts, num_classes

    # Initialize recurrent state at the first time step of each batch tile.
    @pl.when(t == 0)
    def _init():
        h_scr[...] = h0_ref[...]
        c_scr[...] = c0_ref[...]

    x_t = x_ref[0]                    # (tb, I)
    h_prev = h_scr[...]               # (tb, H)
    c_prev = c_scr[...]               # (tb, H)

    # ---- LSTM cell (PyTorch gate order: i, f, g, o) -------------------------
    gates = (
        jnp.dot(x_t, w_ih_ref[...], preferred_element_type=jnp.float32)
        + jnp.dot(h_prev, w_hh_ref[...], preferred_element_type=jnp.float32)
        + b_lstm_ref[...]
    )                                  # (tb, 4H), 4H lane-dense (multiple of 128)
    i_g = _sigmoid(gates[:, 0:H])
    f_g = _sigmoid(gates[:, H:2 * H])
    g_g = jnp.tanh(gates[:, 2 * H:3 * H])
    o_g = _sigmoid(gates[:, 3 * H:4 * H])

    c_new = f_g * c_prev + i_g * g_g
    h_new = o_g * jnp.tanh(c_new)
    c_scr[...] = c_new
    h_scr[...] = h_new

    # ---- MoO head: gate softmax + all K experts in one matmul + combine -----
    logits = jnp.dot(h_new, wg_ref[...], preferred_element_type=jnp.float32) + bg_ref[...]
    logits = logits - jnp.max(logits, axis=-1, keepdims=True)
    p = jnp.exp(logits)
    coef = p / jnp.sum(p, axis=-1, keepdims=True)            # (tb, K) softmax

    experts = jnp.dot(h_new, we_ref[...], preferred_element_type=jnp.float32) + be_ref[...]
    # experts: (tb, K*C)  — weighted sum over experts (small static K loop).
    acc = jnp.zeros((h_new.shape[0], C), jnp.float32)
    for j in range(K):
        acc = acc + experts[:, j * C:(j + 1) * C] * coef[:, j:j + 1]

    o_ref[0] = acc.astype(o_ref.dtype)
    h_n_ref[...] = h_new.astype(h_n_ref.dtype)
    c_n_ref[...] = c_new.astype(c_n_ref.dtype)


def _pick_batch_tile(batch):
    if batch <= 8:
        return batch
    for tb in (512, 256, 128, 64, 32, 16, 8):
        if batch % tb == 0:
            return tb
    return batch  # falls back to the full-array-dim escape of the (8,128) rule


def lstm_moo_forward(params, x, h0, c0, *, hidden_size, num_experts, num_classes):
    T, B, I = x.shape
    H, K, C = hidden_size, num_experts, num_classes
    tb = _pick_batch_tile(B)

    kernel = functools.partial(
        _lstm_moo_kernel, hidden_size=H, num_experts=K, num_classes=C
    )

    # Advisory cost estimate (helps XLA schedule around the custom call).
    flops = T * B * (8 * H * (I + H) + 2 * H * K * (1 + C))
    transcendentals = T * B * (5 * H + K)
    bytes_accessed = 4 * (x.size + T * B * C + 4 * B * H) + (B // tb) * 4 * (
        I * 4 * H + H * 4 * H + 4 * H + H * K + K + H * K * C + K * C
    )

    o, h_n, c_n = pl.pallas_call(
        kernel,
        out_shape=(
            jax.ShapeDtypeStruct((T, B, C), jnp.float32),
            jax.ShapeDtypeStruct((B, H), jnp.float32),
            jax.ShapeDtypeStruct((B, H), jnp.float32),
        ),
        grid_spec=pltpu.PrefetchScalarGridSpec(
            num_scalar_prefetch=0,
            grid=(B // tb, T),
            in_specs=[
                pl.BlockSpec((1, tb, I), lambda b, t: (t, b, 0)),   # x_t (pipelined)
                pl.BlockSpec((tb, H), lambda b, t: (b, 0)),         # h0
                pl.BlockSpec((tb, H), lambda b, t: (b, 0)),         # c0
                pl.BlockSpec((I, 4 * H), lambda b, t: (0, 0)),      # W_ih^T (resident)
                pl.BlockSpec((H, 4 * H), lambda b, t: (0, 0)),      # W_hh^T (resident)
                pl.BlockSpec((1, 4 * H), lambda b, t: (0, 0)),      # b_ih + b_hh
                pl.BlockSpec((H, K), lambda b, t: (0, 0)),          # gate W^T (resident)
                pl.BlockSpec((1, K), lambda b, t: (0, 0)),          # gate b
                pl.BlockSpec((H, K * C), lambda b, t: (0, 0)),      # fused expert W^T (resident)
                pl.BlockSpec((1, K * C), lambda b, t: (0, 0)),      # fused expert b
            ],
            out_specs=[
                pl.BlockSpec((1, tb, C), lambda b, t: (t, b, 0)),   # o
                pl.BlockSpec((tb, H), lambda b, t: (b, 0)),         # h_n (resident)
                pl.BlockSpec((tb, H), lambda b, t: (b, 0)),         # c_n (resident)
            ],
            scratch_shapes=[
                pltpu.VMEM((tb, H), jnp.float32),                   # h state
                pltpu.VMEM((tb, H), jnp.float32),                   # c state
            ],
        ),
        compiler_params=pltpu.CompilerParams(
            dimension_semantics=("parallel", "arbitrary"),
        ),
        cost_estimate=pl.CostEstimate(
            flops=int(flops),
            transcendentals=int(transcendentals),
            bytes_accessed=int(bytes_accessed),
        ),
    )(
        x, h0, c0,
        params["w_ih_t"], params["w_hh_t"], params["b_lstm"],
        params["wg_t"], params["bg"], params["we_t"], params["be"],
    )
    return o, h_n, c_n


class ExampleME2Pallas:
    """JAX/Pallas re-implementation of PyTorch ExampleME2 (inference forward)."""

    def __init__(self, input_size, hidden_size, num_classes,
                 num_layers=1, num_directions=1, dropout=0, activation=None,
                 seed=0):
        # TODO(synk): multi-layer / bidirectional LSTM, train-mode dropout and
        # PackedSequence inputs are not implemented in the Pallas path.
        assert num_layers == 1 and num_directions == 1 and dropout == 0
        self.input_size = input_size
        self.hidden_size = hidden_size
        self.num_classes = num_classes
        self.num_layers = num_layers
        self.num_directions = num_directions
        self.dropout = dropout
        self.activation = activation
        self.seed = seed
        self.k = None
        self.T = None
        self.params = None

    def setKT(self, k, t):
        """k experts, maximum of t time steps (mirrors the PyTorch API)."""
        self.k = k
        self.T = t
        H, I, C = self.hidden_size, self.input_size, self.num_classes
        key = jax.random.PRNGKey(self.seed)
        ks = jax.random.split(key, 8)
        lb = 1.0 / math.sqrt(H)                       # nn.LSTM init bound
        w_ih = jax.random.uniform(ks[0], (4 * H, I), jnp.float32, -lb, lb)
        w_hh = jax.random.uniform(ks[1], (4 * H, H), jnp.float32, -lb, lb)
        b_ih = jax.random.uniform(ks[2], (4 * H,), jnp.float32, -lb, lb)
        b_hh = jax.random.uniform(ks[3], (4 * H,), jnp.float32, -lb, lb)
        gb = 1.0 / math.sqrt(H * self.num_directions)  # nn.Linear init bound
        wg = jax.random.uniform(ks[4], (k, H), jnp.float32, -gb, gb)
        bg = jax.random.uniform(ks[5], (k,), jnp.float32, -gb, gb)
        we = jax.random.uniform(ks[6], (k, C, H), jnp.float32, -gb, gb)
        be = jax.random.uniform(ks[7], (k, C), jnp.float32, -gb, gb)
        # Pre-transposed / fused layouts so __call__ emits no transposes.
        self.params = {
            "w_ih_t": jnp.transpose(w_ih),                               # (I, 4H)
            "w_hh_t": jnp.transpose(w_hh),                               # (H, 4H)
            "b_lstm": (b_ih + b_hh)[None, :],                            # (1, 4H)
            "wg_t": jnp.transpose(wg),                                   # (H, K)
            "bg": bg[None, :],                                           # (1, K)
            "we_t": jnp.transpose(we, (2, 0, 1)).reshape(H, k * C),      # (H, K*C)
            "be": be.reshape(1, k * C),                                  # (1, K*C)
        }

    def __call__(self, x, hidden, input_lengths=None):
        # input_lengths is accepted but unused, exactly like the original forward.
        assert self.params is not None, "call setKT(k, t) first"
        h0, c0 = hidden
        B = x.shape[1]
        h0 = jnp.reshape(h0, (B, self.hidden_size)).astype(jnp.float32)
        c0 = jnp.reshape(c0, (B, self.hidden_size)).astype(jnp.float32)
        o, h_n, c_n = lstm_moo_forward(
            self.params, x.astype(jnp.float32), h0, c0,
            hidden_size=self.hidden_size,
            num_experts=self.k,
            num_classes=self.num_classes,
        )
        if self.activation is not None:
            o = self.activation(o)
        return o, (h_n[None], c_n[None])


def _reference_forward(params, x, h0, c0, H, K, C):
    """Pure-JAX reference with identical math (LSTM scan + MoO head)."""
    w_ih_t, w_hh_t, b = params["w_ih_t"], params["w_hh_t"], params["b_lstm"][0]

    def step(carry, x_t):
        h, c = carry
        gates = x_t @ w_ih_t + h @ w_hh_t + b
        i = _sigmoid(gates[:, 0:H])
        f = _sigmoid(gates[:, H:2 * H])
        g = jnp.tanh(gates[:, 2 * H:3 * H])
        o = _sigmoid(gates[:, 3 * H:4 * H])
        c = f * c + i * g
        h = o * jnp.tanh(c)
        return (h, c), h

    (h_n, c_n), hs = jax.lax.scan(step, (h0, c0), x)
    T, B = x.shape[0], x.shape[1]
    o_flat = hs.reshape(T * B, H)
    coef = jax.nn.softmax(o_flat @ params["wg_t"] + params["bg"][0], axis=1)
    ex = (o_flat @ params["we_t"] + params["be"][0]).reshape(T * B, K, C)
    out = jnp.sum(ex * coef[:, :, None], axis=1).reshape(T, B, C)
    return out, (h_n, c_n)


if __name__ == "__main__":
    # Small deterministic example: T=8 steps, B=4, input=16, hidden=32
    # (so 4*H = 128 is lane-dense), k=4 experts, num_classes=16.
    input_size, hidden_size, num_classes = 16, 32, 16
    k, T, B = 4, 8, 4

    model = ExampleME2Pallas(input_size, hidden_size, num_classes,
                             num_layers=1, num_directions=1, dropout=0,
                             activation=None, seed=0)
    model.setKT(k, T)

    key = jax.random.PRNGKey(0)
    kx, kh, kc = jax.random.split(key, 3)
    x = jax.random.normal(kx, (T, B, input_size), dtype=jnp.float32)
    h0 = jax.random.normal(kh, (1, B, hidden_size), dtype=jnp.float32)
    c0 = jax.random.normal(kc, (1, B, hidden_size), dtype=jnp.float32)

    out = model(x, (h0, c0), input_lengths=None)
    out = jax.block_until_ready(out)
    o, (h_n, c_n) = out

    o_ref, (h_ref, c_ref) = _reference_forward(
        model.params, x, h0[0], c0[0], hidden_size, k, num_classes
    )

    assert o.shape == (T, B, num_classes), o.shape
    assert h_n.shape == (1, B, hidden_size), h_n.shape
    assert c_n.shape == (1, B, hidden_size), c_n.shape
    assert jnp.allclose(o, o_ref, atol=5e-4, rtol=5e-4), "output mismatch vs reference"
    assert jnp.allclose(h_n[0], h_ref, atol=5e-4, rtol=5e-4), "h_n mismatch vs reference"
    assert jnp.allclose(c_n[0], c_ref, atol=5e-4, rtol=5e-4), "c_n mismatch vs reference"

    print("KERNEL_OK")
</pallas_src>

<mosaic_0001>
module attributes {stable_mosaic.version = 11 : i64} {
  func.func @_lstm_moo_kernel(%arg0: i32, %arg1: i32, %arg2: memref<1x4x16xf32, #tpu.memory_space<vmem>>, %arg3: memref<4x32xf32, #tpu.memory_space<vmem>>, %arg4: memref<4x32xf32, #tpu.memory_space<vmem>>, %arg5: memref<16x128xf32, #tpu.memory_space<vmem>>, %arg6: memref<32x128xf32, #tpu.memory_space<vmem>>, %arg7: memref<1x128xf32, #tpu.memory_space<vmem>>, %arg8: memref<32x4xf32, #tpu.memory_space<vmem>>, %arg9: memref<1x4xf32, #tpu.memory_space<vmem>>, %arg10: memref<32x64xf32, #tpu.memory_space<vmem>>, %arg11: memref<1x64xf32, #tpu.memory_space<vmem>>, %arg12: memref<1x4x16xf32, #tpu.memory_space<vmem>>, %arg13: memref<4x32xf32, #tpu.memory_space<vmem>>, %arg14: memref<4x32xf32, #tpu.memory_space<vmem>>, %arg15: memref<4x32xf32, #tpu.memory_space<vmem>>, %arg16: memref<4x32xf32, #tpu.memory_space<vmem>>) attributes {dimension_semantics = [#tpu.dimension_semantics<parallel>, #tpu.dimension_semantics<arbitrary>], iteration_bounds = array<i64: 1, 8>, scalar_prefetch = 0 : i64, scratch_operands = 2 : i64, tpu.core_type = #tpu.core_type<tc>, window_params = [{transform_indices = @transform_0, window_bounds = array<i64: 1, 4, 16>}, {transform_indices = @transform_1, window_bounds = array<i64: 4, 32>}, {transform_indices = @transform_2, window_bounds = array<i64: 4, 32>}, {pipeline_mode = #tpu.pipeline_mode<synchronous>, transform_indices = @transform_3, window_bounds = array<i64: 16, 128>}, {pipeline_mode = #tpu.pipeline_mode<synchronous>, transform_indices = @transform_4, window_bounds = array<i64: 32, 128>}, {pipeline_mode = #tpu.pipeline_mode<synchronous>, transform_indices = @transform_5, window_bounds = array<i64: 1, 128>}, {pipeline_mode = #tpu.pipeline_mode<synchronous>, transform_indices = @transform_6, window_bounds = array<i64: 32, 4>}, {pipeline_mode = #tpu.pipeline_mode<synchronous>, transform_indices = @transform_7, window_bounds = array<i64: 1, 4>}, {pipeline_mode = #tpu.pipeline_mode<synchronous>, transform_indices = @transform_8, window_bounds = array<i64: 32, 64>}, {pipeline_mode = #tpu.pipeline_mode<synchronous>, transform_indices = @transform_9, window_bounds = array<i64: 1, 64>}, {transform_indices = @transform_10, window_bounds = array<i64: 1, 4, 16>}, {transform_indices = @transform_11, window_bounds = array<i64: 4, 32>}, {transform_indices = @transform_12, window_bounds = array<i64: 4, 32>}]} {
    %c0_i32 = arith.constant 0 : i32
    %0 = arith.cmpi eq, %arg1, %c0_i32 : i32
    %1 = arith.extui %0 : i1 to i32
    %c0_i32_0 = arith.constant 0 : i32
    %2 = arith.cmpi ne, %1, %c0_i32_0 : i32
    scf.if %2 {
      %c0_47 = arith.constant 0 : index
      %c0_48 = arith.constant 0 : index
      %93 = vector.load %arg3[%c0_47, %c0_48] : memref<4x32xf32, #tpu.memory_space<vmem>>, vector<4x32xf32>
      %c0_49 = arith.constant 0 : index
      %c0_50 = arith.constant 0 : index
      %94 = vector.load %arg15[%c0_49, %c0_50] : memref<4x32xf32, #tpu.memory_space<vmem>>, vector<4x32xf32>
      tpu.vector_store %arg15[%c0_49, %c0_50], %93 {strides = array<i32>} : memref<4x32xf32, #tpu.memory_space<vmem>>, vector<4x32xf32>,
      %c0_51 = arith.constant 0 : index
      %c0_52 = arith.constant 0 : index
      %95 = vector.load %arg4[%c0_51, %c0_52] : memref<4x32xf32, #tpu.memory_space<vmem>>, vector<4x32xf32>
      %c0_53 = arith.constant 0 : index
      %c0_54 = arith.constant 0 : index
      %96 = vector.load %arg16[%c0_53, %c0_54] : memref<4x32xf32, #tpu.memory_space<vmem>>, vector<4x32xf32>
      tpu.vector_store %arg16[%c0_53, %c0_54], %95 {strides = array<i32>} : memref<4x32xf32, #tpu.memory_space<vmem>>, vector<4x32xf32>,
    } else {
    }
    %c0 = arith.constant 0 : index
    %c0_1 = arith.constant 0 : index
    %c0_2 = arith.constant 0 : index
    %3 = vector.load %arg2[%c0, %c0_1, %c0_2] : memref<1x4x16xf32, #tpu.memory_space<vmem>>, vector<1x4x16xf32>
    %4 = vector.shape_cast %3 : vector<1x4x16xf32> to vector<4x16xf32>
    %c0_3 = arith.constant 0 : index
    %c0_4 = arith.constant 0 : index
    %5 = vector.load %arg15[%c0_3, %c0_4] : memref<4x32xf32, #tpu.memory_space<vmem>>, vector<4x32xf32>
    %c0_5 = arith.constant 0 : index
    %c0_6 = arith.constant 0 : index
    %6 = vector.load %arg16[%c0_5, %c0_6] : memref<4x32xf32, #tpu.memory_space<vmem>>, vector<4x32xf32>
    %c0_7 = arith.constant 0 : index
    %c0_8 = arith.constant 0 : index
    %7 = vector.load %arg5[%c0_7, %c0_8] : memref<16x128xf32, #tpu.memory_space<vmem>>, vector<16x128xf32>
    %cst = arith.constant dense<0.000000e+00> : vector<4x128xf32>
    %8 = tpu.matmul %4, %7, %cst {dimension_numbers = #tpu.dot_dimension_numbers<[1], [0], [0], [1], [0, 0, 1, 1], [], []>, precision = #tpu.contract_precision<fp32>} : vector<4x16xf32>, vector<16x128xf32>, vector<4x128xf32> -> vector<4x128xf32>
    %c0_9 = arith.constant 0 : index
    %c0_10 = arith.constant 0 : index
    %9 = vector.load %arg6[%c0_9, %c0_10] : memref<32x128xf32, #tpu.memory_space<vmem>>, vector<32x128xf32>
    %cst_11 = arith.constant dense<0.000000e+00> : vector<4x128xf32>
    %10 = tpu.matmul %5, %9, %cst_11 {dimension_numbers = #tpu.dot_dimension_numbers<[1], [0], [0], [1], [0, 0, 1, 1], [], []>, precision = #tpu.contract_precision<fp32>} : vector<4x32xf32>, vector<32x128xf32>, vector<4x128xf32> -> vector<4x128xf32>
    %11 = arith.addf %8, %10 : vector<4x128xf32>
    %c0_12 = arith.constant 0 : index
    %c0_13 = arith.constant 0 : index
    %12 = vector.load %arg7[%c0_12, %c0_13] : memref<1x128xf32, #tpu.memory_space<vmem>>, vector<1x128xf32>
    %13 = vector.broadcast %12 : vector<1x128xf32> to vector<4x128xf32>
    %14 = arith.addf %11, %13 : vector<4x128xf32>
    %15 = vector.extract_strided_slice %14 {offsets = [0, 0], sizes = [4, 32], strides = [1, 1]} : vector<4x128xf32> to vector<4x32xf32>
    %cst_14 = arith.constant 0.000000e+00 : f32
    %16 = vector.broadcast %cst_14 : f32 to vector<4x32xf32>
    %17 = arith.subf %16, %15 : vector<4x32xf32>
    %18 = math.exp %17 : vector<4x32xf32>
    %cst_15 = arith.constant 1.000000e+00 : f32
    %19 = vector.broadcast %cst_15 : f32 to vector<4x32xf32>
    %20 = arith.addf %19, %18 : vector<4x32xf32>
    %cst_16 = arith.constant 1.000000e+00 : f32
    %21 = vector.broadcast %cst_16 : f32 to vector<4x32xf32>
    %22 = arith.divf %21, %20 : vector<4x32xf32>
    %23 = vector.extract_strided_slice %14 {offsets = [0, 32], sizes = [4, 32], strides = [1, 1]} : vector<4x128xf32> to vector<4x32xf32>
    %cst_17 = arith.constant 0.000000e+00 : f32
    %24 = vector.broadcast %cst_17 : f32 to vector<4x32xf32>
    %25 = arith.subf %24, %23 : vector<4x32xf32>
    %26 = math.exp %25 : vector<4x32xf32>
    %cst_18 = arith.constant 1.000000e+00 : f32
    %27 = vector.broadcast %cst_18 : f32 to vector<4x32xf32>
    %28 = arith.addf %27, %26 : vector<4x32xf32>
    %cst_19 = arith.constant 1.000000e+00 : f32
    %29 = vector.broadcast %cst_19 : f32 to vector<4x32xf32>
    %30 = arith.divf %29, %28 : vector<4x32xf32>
    %31 = vector.extract_strided_slice %14 {offsets = [0, 64], sizes = [4, 32], strides = [1, 1]} : vector<4x128xf32> to vector<4x32xf32>
    %32 = math.tanh %31 : vector<4x32xf32>
    %33 = vector.extract_strided_slice %14 {offsets = [0, 96], sizes = [4, 32], strides = [1, 1]} : vector<4x128xf32> to vector<4x32xf32>
    %cst_20 = arith.constant 0.000000e+00 : f32
    %34 = vector.broadcast %cst_20 : f32 to vector<4x32xf32>
    %35 = arith.subf %34, %33 : vector<4x32xf32>
    %36 = math.exp %35 : vector<4x32xf32>
    %cst_21 = arith.constant 1.000000e+00 : f32
    %37 = vector.broadcast %cst_21 : f32 to vector<4x32xf32>
    %38 = arith.addf %37, %36 : vector<4x32xf32>
    %cst_22 = arith.constant 1.000000e+00 : f32
    %39 = vector.broadcast %cst_22 : f32 to vector<4x32xf32>
    %40 = arith.divf %39, %38 : vector<4x32xf32>
    %41 = arith.mulf %30, %6 : vector<4x32xf32>
    %42 = arith.mulf %22, %32 : vector<4x32xf32>
    %43 = arith.addf %41, %42 : vector<4x32xf32>
    %44 = math.tanh %43 : vector<4x32xf32>
    %45 = arith.mulf %40, %44 : vector<4x32xf32>
    %c0_23 = arith.constant 0 : index
    %c0_24 = arith.constant 0 : index
    %46 = vector.load %arg16[%c0_23, %c0_24] : memref<4x32xf32, #tpu.memory_space<vmem>>, vector<4x32xf32>
    tpu.vector_store %arg16[%c0_23, %c0_24], %43 {strides = array<i32>} : memref<4x32xf32, #tpu.memory_space<vmem>>, vector<4x32xf32>,
    %c0_25 = arith.constant 0 : index
    %c0_26 = arith.constant 0 : index
    %47 = vector.load %arg15[%c0_25, %c0_26] : memref<4x32xf32, #tpu.memory_space<vmem>>, vector<4x32xf32>
    tpu.vector_store %arg15[%c0_25, %c0_26], %45 {strides = array<i32>} : memref<4x32xf32, #tpu.memory_space<vmem>>, vector<4x32xf32>,
    %c0_27 = arith.constant 0 : index
    %c0_28 = arith.constant 0 : index
    %48 = vector.load %arg8[%c0_27, %c0_28] : memref<32x4xf32, #tpu.memory_space<vmem>>, vector<32x4xf32>
    %cst_29 = arith.constant dense<0.000000e+00> : vector<4x4xf32>
    %49 = tpu.matmul %45, %48, %cst_29 {dimension_numbers = #tpu.dot_dimension_numbers<[1], [0], [0], [1], [0, 0, 1, 1], [], []>, precision = #tpu.contract_precision<fp32>} : vector<4x32xf32>, vector<32x4xf32>, vector<4x4xf32> -> vector<4x4xf32>
    %c0_30 = arith.constant 0 : index
    %c0_31 = arith.constant 0 : index
    %50 = vector.load %arg9[%c0_30, %c0_31] : memref<1x4xf32, #tpu.memory_space<vmem>>, vector<1x4xf32>
    %51 = vector.broadcast %50 : vector<1x4xf32> to vector<4x4xf32>
    %52 = arith.addf %49, %51 : vector<4x4xf32>
    %cst_32 = arith.constant dense<0xFF800000> : vector<4xf32>
    %53 = vector.multi_reduction <maximumf>, %52, %cst_32 [1] : vector<4x4xf32> to vector<4xf32>
    %54 = vector.shape_cast %53 : vector<4xf32> to vector<4x1xf32>
    %55 = vector.broadcast %54 : vector<4x1xf32> to vector<4x4xf32>
    %56 = arith.subf %52, %55 : vector<4x4xf32>
    %57 = math.exp %56 : vector<4x4xf32>
    %cst_33 = arith.constant dense<0.000000e+00> : vector<4xf32>
    %58 = vector.multi_reduction <add>, %57, %cst_33 [1] : vector<4x4xf32> to vector<4xf32>
    %59 = vector.shape_cast %58 : vector<4xf32> to vector<4x1xf32>
    %60 = vector.broadcast %59 : vector<4x1xf32> to vector<4x4xf32>
    %61 = arith.divf %57, %60 : vector<4x4xf32>
    %c0_34 = arith.constant 0 : index
    %c0_35 = arith.constant 0 : index
    %62 = vector.load %arg10[%c0_34, %c0_35] : memref<32x64xf32, #tpu.memory_space<vmem>>, vector<32x64xf32>
    %cst_36 = arith.constant dense<0.000000e+00> : vector<4x64xf32>
    %63 = tpu.matmul %45, %62, %cst_36 {dimension_numbers = #tpu.dot_dimension_numbers<[1], [0], [0], [1], [0, 0, 1, 1], [], []>, precision = #tpu.contract_precision<fp32>} : vector<4x32xf32>, vector<32x64xf32>, vector<4x64xf32> -> vector<4x64xf32>
    %c0_37 = arith.constant 0 : index
    %c0_38 = arith.constant 0 : index
    %64 = vector.load %arg11[%c0_37, %c0_38] : memref<1x64xf32, #tpu.memory_space<vmem>>, vector<1x64xf32>
    %65 = vector.broadcast %64 : vector<1x64xf32> to vector<4x64xf32>
    %66 = arith.addf %63, %65 : vector<4x64xf32>
    %cst_39 = arith.constant 0.000000e+00 : f32
    %67 = vector.broadcast %cst_39 : f32 to vector<4x16xf32>
    %68 = vector.extract_strided_slice %66 {offsets = [0, 0], sizes = [4, 16], strides = [1, 1]} : vector<4x64xf32> to vector<4x16xf32>
    %69 = vector.extract_strided_slice %61 {offsets = [0, 0], sizes = [4, 1], strides = [1, 1]} : vector<4x4xf32> to vector<4x1xf32>
    %70 = vector.broadcast %69 : vector<4x1xf32> to vector<4x16xf32>
    %71 = arith.mulf %68, %70 : vector<4x16xf32>
    %72 = arith.addf %67, %71 : vector<4x16xf32>
    %73 = vector.extract_strided_slice %66 {offsets = [0, 16], sizes = [4, 16], strides = [1, 1]} : vector<4x64xf32> to vector<4x16xf32>
    %74 = vector.extract_strided_slice %61 {offsets = [0, 1], sizes = [4, 1], strides = [1, 1]} : vector<4x4xf32> to vector<4x1xf32>
    %75 = vector.broadcast %74 : vector<4x1xf32> to vector<4x16xf32>
    %76 = arith.mulf %73, %75 : vector<4x16xf32>
    %77 = arith.addf %72, %76 : vector<4x16xf32>
    %78 = vector.extract_strided_slice %66 {offsets = [0, 32], sizes = [4, 16], strides = [1, 1]} : vector<4x64xf32> to vector<4x16xf32>
    %79 = vector.extract_strided_slice %61 {offsets = [0, 2], sizes = [4, 1], strides = [1, 1]} : vector<4x4xf32> to vector<4x1xf32>
    %80 = vector.broadcast %79 : vector<4x1xf32> to vector<4x16xf32>
    %81 = arith.mulf %78, %80 : vector<4x16xf32>
    %82 = arith.addf %77, %81 : vector<4x16xf32>
    %83 = vector.extract_strided_slice %66 {offsets = [0, 48], sizes = [4, 16], strides = [1, 1]} : vector<4x64xf32> to vector<4x16xf32>
    %84 = vector.extract_strided_slice %61 {offsets = [0, 3], sizes = [4, 1], strides = [1, 1]} : vector<4x4xf32> to vector<4x1xf32>
    %85 = vector.broadcast %84 : vector<4x1xf32> to vector<4x16xf32>
    %86 = arith.mulf %83, %85 : vector<4x16xf32>
    %87 = arith.addf %82, %86 : vector<4x16xf32>
    %c0_40 = arith.constant 0 : index
    %c0_41 = arith.constant 0 : index
    %c0_42 = arith.constant 0 : index
    %88 = vector.load %arg12[%c0_40, %c0_41, %c0_42] : memref<1x4x16xf32, #tpu.memory_space<vmem>>, vector<1x4x16xf32>
    %89 = vector.shape_cast %88 : vector<1x4x16xf32> to vector<4x16xf32>
    %90 = vector.shape_cast %87 : vector<4x16xf32> to vector<1x4x16xf32>
    tpu.vector_store %arg12[%c0_40, %c0_41, %c0_42], %90 {strides = array<i32>} : memref<1x4x16xf32, #tpu.memory_space<vmem>>, vector<1x4x16xf32>,
    %c0_43 = arith.constant 0 : index
    %c0_44 = arith.constant 0 : index
    %91 = vector.load %arg13[%c0_43, %c0_44] : memref<4x32xf32, #tpu.memory_space<vmem>>, vector<4x32xf32>
    tpu.vector_store %arg13[%c0_43, %c0_44], %45 {strides = array<i32>} : memref<4x32xf32, #tpu.memory_space<vmem>>, vector<4x32xf32>,
    %c0_45 = arith.constant 0 : index
    %c0_46 = arith.constant 0 : index
    %92 = vector.load %arg14[%c0_45, %c0_46] : memref<4x32xf32, #tpu.memory_space<vmem>>, vector<4x32xf32>
    tpu.vector_store %arg14[%c0_45, %c0_46], %43 {strides = array<i32>} : memref<4x32xf32, #tpu.memory_space<vmem>>, vector<4x32xf32>,
    return
  }
  func.func @transform_0(%arg0: i32, %arg1: i32) -> (i32, i32, i32) {
    %c0_i32 = arith.constant 0 : i32
    %c0_i32_0 = arith.constant 0 : i32
    return %arg1, %arg0, %c0_i32 : i32, i32, i32
  }
  func.func @transform_1(%arg0: i32, %arg1: i32) -> (i32, i32) {
    %c0_i32 = arith.constant 0 : i32
    %c0_i32_0 = arith.constant 0 : i32
    return %arg0, %c0_i32 : i32, i32
  }
  func.func @transform_2(%arg0: i32, %arg1: i32) -> (i32, i32) {
    %c0_i32 = arith.constant 0 : i32
    %c0_i32_0 = arith.constant 0 : i32
    return %arg0, %c0_i32 : i32, i32
  }
  func.func @transform_3(%arg0: i32, %arg1: i32) -> (i32, i32) {
    %c0_i32 = arith.constant 0 : i32
    %c0_i32_0 = arith.constant 0 : i32
    %c0_i32_1 = arith.constant 0 : i32
    return %c0_i32, %c0_i32_0 : i32, i32
  }
  func.func @transform_4(%arg0: i32, %arg1: i32) -> (i32, i32) {
    %c0_i32 = arith.constant 0 : i32
    %c0_i32_0 = arith.constant 0 : i32
    %c0_i32_1 = arith.constant 0 : i32
    return %c0_i32, %c0_i32_0 : i32, i32
  }
  func.func @transform_5(%arg0: i32, %arg1: i32) -> (i32, i32) {
    %c0_i32 = arith.constant 0 : i32
    %c0_i32_0 = arith.constant 0 : i32
    %c0_i32_1 = arith.constant 0 : i32
    return %c0_i32, %c0_i32_0 : i32, i32
  }
  func.func @transform_6(%arg0: i32, %arg1: i32) -> (i32, i32) {
    %c0_i32 = arith.constant 0 : i32
    %c0_i32_0 = arith.constant 0 : i32
    %c0_i32_1 = arith.constant 0 : i32
    return %c0_i32, %c0_i32_0 : i32, i32
  }
  func.func @transform_7(%arg0: i32, %arg1: i32) -> (i32, i32) {
    %c0_i32 = arith.constant 0 : i32
    %c0_i32_0 = arith.constant 0 : i32
    %c0_i32_1 = arith.constant 0 : i32
    return %c0_i32, %c0_i32_0 : i32, i32
  }
  func.func @transform_8(%arg0: i32, %arg1: i32) -> (i32, i32) {
    %c0_i32 = arith.constant 0 : i32
    %c0_i32_0 = arith.constant 0 : i32
    %c0_i32_1 = arith.constant 0 : i32
    return %c0_i32, %c0_i32_0 : i32, i32
  }
  func.func @transform_9(%arg0: i32, %arg1: i32) -> (i32, i32) {
    %c0_i32 = arith.constant 0 : i32
    %c0_i32_0 = arith.constant 0 : i32
    %c0_i32_1 = arith.constant 0 : i32
    return %c0_i32, %c0_i32_0 : i32, i32
  }
  func.func @transform_10(%arg0: i32, %arg1: i32) -> (i32, i32, i32) {
    %c0_i32 = arith.constant 0 : i32
    %c0_i32_0 = arith.constant 0 : i32
    return %arg1, %arg0, %c0_i32 : i32, i32, i32
  }
  func.func @transform_11(%arg0: i32, %arg1: i32) -> (i32, i32) {
    %c0_i32 = arith.constant 0 : i32
    %c0_i32_0 = arith.constant 0 : i32
    return %arg0, %c0_i32 : i32, i32
  }
  func.func @transform_12(%arg0: i32, %arg1: i32) -> (i32, i32) {
    %c0_i32 = arith.constant 0 : i32
    %c0_i32_0 = arith.constant 0 : i32
    return %arg0, %c0_i32 : i32, i32
  }
}

</mosaic_0001>

<bundles_post_ra>
// kernel: tpu_custom_call.1
= control target key start
LH: loop header
LB: loop body
LE: loop exit
PB: predicated region body
PF: predicated region fallthrough
CT: control target
= control target key end

     0   :  { %s2394_s0 = inlined_call_operand.vmem [shape: f32[8,4,16], index: 0, kind: input, shape index: {}]   ;;  %s2395_s1 = inlined_call_operand.vmem [shape: f32[4,32], index: 1, kind: input, shape index: {}]   ;;  %s2396_s2 = inlined_call_operand.hbm [shape: f32[4,32], index: 2, kind: input, shape index: {}]   ;;  %s2397_s3 = inlined_call_operand.hbm [shape: f32[16,128], index: 3, kind: input, shape index: {}]   ;;  %s2398_s4 = inlined_call_operand.hbm [shape: f32[32,128], index: 4, kind: input, shape index: {}]   ;;  %s2399_s5 = inlined_call_operand.vmem [shape: f32[1,128], index: 5, kind: input, shape index: {}]   ;;  %s2400_s6 = inlined_call_operand.vmem [shape: f32[32,4], index: 6, kind: input, shape index: {}]   ;;  %s2401_s7 = inlined_call_operand.vmem [shape: f32[1,4], index: 7, kind: input, shape index: {}]   ;;  %s2402_s8 = inlined_call_operand.hbm [shape: f32[32,64], index: 8, kind: input, shape index: {}]   ;;  %s2403_s9 = inlined_call_operand.vmem [shape: f32[1,64], index: 9, kind: input, shape index: {}]   ;;  %s2404_s10 = inlined_call_operand.hbm [shape: f32[8,4,16], index: 10, kind: output, shape index: {0}]   ;;  %s2405_s11 = inlined_call_operand.hbm [shape: f32[4,32], index: 11, kind: output, shape index: {1}]   ;;  %s2406_s12 = inlined_call_operand.hbm [shape: f32[4,32], index: 12, kind: output, shape index: {2}]  }
   0x1   :  { %2417 = sst [smem:[#allocation29_spill]] %s2397_s3 }
   0x2   :  { %2418 = sst [smem:[#allocation30_spill]] %s2404_s10 }
   0x3   :  { %2419 = sst [smem:[#allocation31_spill]] %s2406_s12 }
   0x4   :  { %18 = vsyncpa [#allocation5], 0 }
   0x5   :  { %19 = vsyncpa [#allocation8], 0 }
   0x6   :  { %20 = vsyncpa [#allocation11], 0 }
   0x7   :  { %21 = vsyncpa [#allocation6], 0 }
   0x8   :  { %23 = vsyncpa [#allocation6 + $0x1], 0 }
   0x9   :  { %24 = vsyncpa [#allocation14], 0  ;;  %s2131_s21 = smov 0   ;;  %s2133_s22 = smov 0  }
   0xa   :  { %s2135_s23 = smov 0   ;;  %s2137_s24 = smov 0  }
   0xb   :  { %s2139_s25 = smov 0   ;;  %s2141_s26 = smov 0  }
   0xc LB: > { %2420 = sst [smem:[#allocation21_spill]] %s2027_s21  ;;  %s1611_s27 = sadd.s32 4294967295, %s2047_s26   ;;  %s2047_s26 = sphi %s2141_s26, %s30_s26   ;;  %s2043_s25 = sphi %s2139_s25, %s2444_s25   ;;  %s2039_s24 = sphi %s2137_s24, %s2443_s24   ;;  %s2035_s23 = sphi %s2135_s23, %s2442_s23   ;;  %s2031_s22 = sphi %s2133_s22, %s2446_s22   ;;  %s2027_s21 = sphi %s2131_s21, %s2445_s21  }
   0xd   : > { %2421 = sst [smem:[#allocation22_spill]] %s2035_s23  ;;  %s1612_s28 = sadd.s32 4294967294, %s2047_s26  }
   0xe   : > { %2422 = sst [smem:[#allocation23_spill]] %s2043_s25  ;;  %s39_s29 = sadd.s32 1, %s2043_s25 }
   0xf   : > { %2423 = sst [smem:[#allocation24_spill]] %s2047_s26  ;;  %s278_s30 = sadd.s32 1, %s2035_s23 }
  0x10   : > { %p40_p0 = scmp.ge.s32.totalorder %s39_s29, 8  ;;  %p288_p1 = scmp.ne.s32.totalorder %s2035_s23, %s2031_s22 }
  0x11   : > { %p2167_p2 = scmp.eq.s32.totalorder %s1611_s27, 7  ;;  %p294_p3 = scmp.ne.s32.totalorder %s2031_s22, %s2027_s21 }
  0x12   : > { %s2448_s29 = smov (%p40_p0, %s39_s29), 0  ;;  %p295_p5 = scmp.eq.s32.totalorder %s1612_s28, 7 }
  0x13   : > { %2425 = sst [smem:[#allocation25_spill]] %s2448_s29  ;;  %p2177_p4 = por %p2167_p2, %p288_p1 }
  0x14   : > { %s273_s15 = ssub.s32 %s2043_s25, %s2448_s29  ;;  %p1613_p6 = scmp.ge.s32.totalorder %s2047_s26, 1 }
  0x15   : > { %s2426_s14 = scalar_select %p2177_p4, 1, 0 }
  0x16   : > { %p276_p7 = scmp.eq.s32.totalorder %s273_s15, 0  ;;  %p2184_p8 = por %p295_p5, %p294_p3 }
  0x17   : > { %2427 = sst [smem:[#allocation26_spill]] %s2426_s14  ;;  %p354_p9 = scmp.lt.s32.totalorder %s2047_s26, 9 }
  0x18   : > { %s2428_s16 = scalar_select %p2184_p8, 1, 0 }
  0x19   : > { %s2190_s17 = scalar_select %p276_p7, %s2035_s23, %s278_s30  }
  0x1a   : > { %2429 = sst [smem:[#allocation27_spill]] %s2428_s16  ;;  %p2192_p10 = pnand %p1613_p6, %p354_p9 }
  0x1b   : > { %2430 = sst [smem:[#allocation28_spill]] %s2190_s17  ;;  %p2196_p11 = scmp.eq.s32.totalorder %s1611_s27, 0 }
  0x1c   : > { %s2433_s3 = sld [smem:[#allocation29_spill]]  ;;  %p1662_p12 = pneg %p2192_p10 }
  0x1d   : > { %s2049_s29 = smov [#allocation7]   ;;  %s2050_s27 = smov 128  }
  0x1e   : > { %s388_s30 = sshll.u32 %s2049_s29, 4  ;;  %p2207_p13 = pnand %p2196_p11, %p1662_p12  ;;  %s389_s30 = int_to_ptr.vmem [resolvable:$true] %s388_s30 }
  0x1f   : > { %s2051_s17 = smov 8   ;;  %s2052_s29 = smov [#allocation4]  }
  0x20   : > { %s377_s23 = sshll.u32 %s2052_s29, 4  ;;  %s400_s26 = sshll.u32 %s2398_s4, 4  ;;  %s378_s23 = int_to_ptr.vmem [resolvable:$true] %s377_s23  ;;  %s401_s26 = int_to_ptr.hbm [resolvable:$true] %s400_s26 }
  0x21   : > { %s2053_s14 = smov [#allocation9]   ;;  %s2054_s20 = smov [#allocation10]  }
  0x22   : > { %s386_s15 = sshll.u32 %s2433_s3, 4  ;;  %s375_s3 = sshll.u32 %s2396_s2, 4  ;;  %s387_s15 = int_to_ptr.hbm [resolvable:$true] %s386_s15  ;;  %s376_s3 = int_to_ptr.hbm [resolvable:$true] %s375_s3 }
  0x23   : > { %1668 = dma.hbm_to_vmem [thread:$0]  (!%p2207_p13), %s387_s15, 256, %s389_s30, [#allocation8], %s2050_s27, %s2050_s27, %s2051_s17  }
  0x24   : > { %1665 = dma.hbm_to_vmem [thread:$0]  (!%p2207_p13), %s376_s3, 64, %s378_s23, [#allocation5]  }
  0x25   : > { %s402_s10 = sshll.u32 %s2053_s14, 4  ;;  %s423_s30 = sshll.u32 %s2402_s8, 4  ;;  %s403_s10 = int_to_ptr.vmem [resolvable:$true] %s402_s10  ;;  %s424_s30 = int_to_ptr.hbm [resolvable:$true] %s423_s30 }
  0x26   : > { %1671 = dma.hbm_to_vmem [thread:$0]  (!%p2207_p13), %s401_s26, 512, %s403_s10, [#allocation8], %s2050_s27, %s2050_s27, %s2051_s17  }
  0x27   : > { %s425_s28 = sshll.u32 %s2054_s20, 4  ;;  %454 = sbr.rel (%p2192_p10) target bundleno = 1355 (0x54b), region = 60  ;;  %s426_s28 = int_to_ptr.vmem [resolvable:$true] %s425_s28 }
  0x28   : > { %1674 = dma.hbm_to_vmem [thread:$0]  (!%p2207_p13), %s424_s30, 512, %s426_s28, [#allocation11], %s2050_s27, %s2050_s27, %s2051_s17  }
  0x2c   : > { %2006 = dma.done.wait (%p2196_p11), [#allocation5], 64  }
  0x2d   : > { %2008 = vsyncadd (%p2196_p11), [#allocation5], 4294967232 }
  0x2e   : > { %2010 = dma.done.wait (%p2196_p11), [#allocation8], 768  }
  0x2f   : > { %2012 = vsyncadd (%p2196_p11), [#allocation8], 4294966528 }
  0x30   : > { %2014 = dma.done.wait (%p2196_p11), [#allocation11], 512  }
  0x31   : > { %2016 = vsyncadd (%p2196_p11), [#allocation11], 4294966784  ;;  %s511_s3 = sand.u32 1, %s2031_s22   ;;  %p518_p0 = scmp.lt.s32.totalorder %s2039_s24, 7 }
  0x32   : > { %s2246_s10 = sshll.u32 %s511_s3, 2  ;;  %p1627_p1 = scmp.ne.s32.totalorder %s2039_s24, 0 }
  0x33   : > { %s519_s12 = scalar_select %p518_p0, %s2039_s24, 7 }
  0x34   : > { %s513_s14 = scalar_lea.vmem [#allocation12], %s2246_s10  ;;  %532 = sbr.rel (%p1627_p1) target bundleno = 60 (0x3c), region = 80 }
  0x35   : > { %s1626_s21 = sshll.u32 %s519_s12, 2 }
  0x36   : > { %s524_s26 = scalar_lea.vmem %s2394_s0, %s1626_s21 }
  0x39   : > { %v533_v0 = vld [vmem:[%s2395_s1] sm:$0xf]  ;;  %vm534_vm0 = vcmask 257024   ;;  %v536_v1 = vld [vmem:[#allocation4] sm:$0xf] }
  0x3a   : > { %535 = vst.msk [vmem:[#allocation2] sm:$0xf] %vm534_vm0, %v533_v0 }
  0x3b   : > { %537 = vst.msk [vmem:[#allocation3] sm:$0xf] %vm534_vm0, %v536_v1 }
  0x3c PF: > { %v546_v2 = vld [vmem:[#allocation9 + $0x18] sm:$0xff]  ;;  %v545_v3 = vld [vmem:[#allocation9 + $0x10] sm:$0xff]  ;;  %v544_v4 = vld [vmem:[#allocation9 + $0x8] sm:$0xff]  ;;  %vm547_vm1 = vcmask 261120   ;;  %vm736_vm2 = vcmask 130048   ;;  %s2055_s27 = smov 64  }
  0x3d   : > { %v2257_v5 = vand.u32 4294901760, %v546_v2  ;;  %v2259_v6 = vand.u32 4294901760, %v545_v3  ;;  %v2261_v7 = vand.u32 4294901760, %v544_v4  ;;  %v543_v8 = vld [vmem:[#allocation9] sm:$0xff]  ;;  %v542_v12 = vld [vmem:[#allocation7 + $0x8] sm:$0xff]  ;;  %v541_v13 = vld [vmem:[#allocation7] sm:$0xff] }
  0x3e   : > { %v2263_v10 = vand.u32 4294901760, %v543_v8  ;;  %v538_v14 = vld [vmem:[%s524_s26] sm:$0xf]  ;;  %v2274_v20 = vand.u32 4294901760, %v542_v12  ;;  %v2276_v21 = vand.u32 4294901760, %v541_v13  ;;  %s2056_s29 = smov 32  }
  0x3f   : > { %v593_v15 = vsub.f32 %v546_v2, %v2257_v5  ;;  %564 = vmatpush.msra.mxu0 %v2257_v5  ;;  %v599_v16 = vsub.f32 %v545_v3, %v2259_v6  ;;  %664 = vmatpush.msra.mxu3 %v2257_v5  ;;  %v605_v17 = vsub.f32 %v544_v4, %v2261_v7  ;;  %v738_v22 = vsel %vm736_vm2, %v538_v14, 0  ;;  %s2057_s17 = smov 96   ;;  %s1440_s28 = sshll.u32 %s2405_s11, 4  ;;  %s1441_s28 = int_to_ptr.hbm [resolvable:$true] %s1440_s28 }
  0x40   : > { %v611_v19 = vsub.f32 %v543_v8, %v2263_v10  ;;  %v782_v27 = vsub.f32 %v542_v12, %v2274_v20  ;;  %v788_v29 = vsub.f32 %v541_v13, %v2276_v21  ;;  %v758_v30 = vand.u32 4294901760, %v738_v22  ;;  %s2435_s23 = sld [smem:[#allocation31_spill]]  ;;  %s2064_s26 = smov [#allocation15]  }
  0x41   : > { %v539_v9 = vld [vmem:[#allocation2] sm:$0xf]  ;;  %635 = vmatpush.msra.mxu2 %v593_v15  ;;  %566 = vmatpush.msra.mxu0 %v2259_v6  ;;  %v594_v23 = vand.u32 4294901760, %v593_v15  ;;  %v600_v24 = vand.u32 4294901760, %v599_v16  ;;  %v606_v26 = vand.u32 4294901760, %v605_v17  ;;  %vm949_vm7 = vcmask 257024  }
  0x42   : > { %v549_v11 = vsel %vm547_vm1, %v539_v9, 0  ;;  %666 = vmatpush.msra.mxu3 %v2259_v6  ;;  %v612_v28 = vand.u32 4294901760, %v611_v19  ;;  %v783_v35 = vand.u32 4294901760, %v782_v27  ;;  %v789_v36 = vand.u32 4294901760, %v788_v29  ;;  %v540_v14 = vld [vmem:[#allocation3] sm:$0xf] }
  0x43   : > { %v2271_v18 = vand.u32 4294901760, %v549_v11  ;;  %638 = vmatpush.msra.mxu2 %v599_v16  ;;  %v595_v31 = vsub.f32 %v593_v15, %v594_v23  ;;  %568 = vmatpush.msra.mxu0 %v2261_v7  ;;  %v601_v32 = vsub.f32 %v599_v16, %v600_v24  ;;  %v607_v33 = vsub.f32 %v605_v17, %v606_v26  ;;  %s1452_s16 = sshll.u32 %s2064_s26, 4  ;;  %s2065_s18 = smov 80   ;;  %s1453_s16 = int_to_ptr.vmem [resolvable:$true] %s1452_s16 }
  0x44   : > { %668 = vmatpush.msra.mxu3 %v2261_v7  ;;  %v759_v37 = vsub.f32 %v738_v22, %v758_v30  ;;  %v613_v41 = vsub.f32 %v611_v19, %v612_v28  ;;  %v784_v42 = vsub.f32 %v782_v27, %v783_v35  ;;  %v790_v43 = vsub.f32 %v788_v29, %v789_v36  ;;  %s1424_s20 = sshll.u32 %s513_s14, 4  ;;  %s1425_s20 = int_to_ptr.vmem [resolvable:$true] %s1424_s20 }
  0x45   : > { %v572_v25 = vsub.f32 %v549_v11, %v2271_v18  ;;  %v596_v38 = vand.u32 4294901760, %v595_v31  ;;  %641 = vmatpush.msra.mxu2 %v605_v17  ;;  %v602_v39 = vand.u32 4294901760, %v601_v32  ;;  %570 = vmatpush.msra.mxu0 %v2263_v10  ;;  %v608_v45 = vand.u32 4294901760, %v607_v33 }
  0x46   : > { %670 = vmatpush.msra.mxu3 %v2263_v10  ;;  %v760_v44 = vand.u32 4294901760, %v759_v37  ;;  %v785_v47 = vand.u32 4294901760, %v784_v42  ;;  %v791_v48 = vand.u32 4294901760, %v790_v43  ;;  %v614_v50 = vand.u32 4294901760, %v613_v41  ;;  %s1454_s25 = sshll.u32 %s2435_s23, 4  ;;  %s1455_s25 = int_to_ptr.hbm [resolvable:$true] %s1454_s25 }
  0x47   : > { %v573_v34 = vand.u32 4294901760, %v572_v25  ;;  %693 = vmatpush.msrb.mxu0 %v594_v23  ;;  %597 = vmatpush.msra.mxu1 %v596_v38  ;;  %vm1151_vm8 = vcmask 27648   ;;  %vm1406_vm13 = vcmask 125952  }
  0x48   : > { %644 = vmatpush.msra.mxu2 %v611_v19  ;;  %v761_v49 = vsub.f32 %v759_v37, %v760_v44  ;;  %786 = vmatpush.msrb.mxu3 %v785_v47 }
  0x49   : > { %v574_v40 = vsub.f32 %v572_v25, %v573_v34  ;;  %647 = vmatmul.f32.vlgmr.msra.gmra.mxu2 %v572_v25  ;;  %674 = vmatmul.f32.vlgmr.msra.gmra.mxu3 %v573_v34 }
  0x4a   : > { %603 = vmatpush.msra.mxu1 %v602_v39  ;;  %755 = vmatpush.msrb.mxu2 %v2274_v20  ;;  %v762_v51 = vand.u32 4294901760, %v761_v49 }
  0x4b   : > { %v575_v46 = vand.u32 4294901760, %v574_v40  ;;  %697 = vmatpush.msrb.mxu0 %v600_v24  ;;  %792 = vmatpush.msrb.mxu3 %v791_v48 }
  0x4c   : > { %609 = vmatpush.msra.mxu1 %v608_v45  ;;  %757 = vmatpush.msrb.mxu2 %v2276_v21 }
  0x4d   : > { %576 = vmatmul.f32.vlgmr.msra.gmra.mxu0 %v575_v46  ;;  %891 = vmatpush.msra.mxu3 %v2274_v20 }
  0x4e   : > { %615 = vmatpush.msra.mxu1 %v614_v50  ;;  %701 = vmatpush.msrb.mxu0 %v606_v26  ;;  %v957_v50 = vld [vmem:[%s2400_s6 + $0x8] sm:$0xff] }
  0x4f   : > { %617 = vmatmul.f32.vlgmr.msra.gmra.mxu1 %v2271_v18  ;;  %866 = vmatpush.msra.mxu2 %v783_v35 }
  0x50   : > { %724 = vmatpush.msrb.mxu1 %v2257_v5  ;;  %705 = vmatpush.msrb.mxu0 %v612_v28 }
  0x51   : > { %763 = vmatmul.f32.vlgmr.msrb.gmra.mxu2 %v762_v51  ;;  %794 = vmatmul.f32.vlgmr.msrb.gmra.mxu3 %v758_v30  ;;  %v982_v51 = vand.u32 4294901760, %v957_v50 }
  0x52   : > { %726 = vmatpush.msrb.mxu1 %v2259_v6  ;;  %814 = vmatpush.msra.mxu0 %v782_v27 }
  0x53   : > { %870 = vmatpush.msra.mxu2 %v789_v36  ;;  %893 = vmatpush.msra.mxu3 %v2276_v21  ;;  %v959_v36 = vld [vmem:[%s2400_s6 + $0x18] sm:$0xff] }
  0x54   : > { %728 = vmatpush.msrb.mxu1 %v2261_v7  ;;  %817 = vmatpush.msra.mxu0 %v788_v29  ;;  %v978_v38 = vand.u32 4294901760, %v959_v36 }
  0x55   : > { %707 = vmatmul.f32.vlgmr.msrb.gmra.mxu0 %v2271_v18 }
  0x56   : > { %730 = vmatpush.msrb.mxu1 %v2263_v10  ;;  %v1762_v10 = vld [vmem:[%s2399_s5] ss:$0 sm:$0xff]  ;;  %v1008_v40 = vsub.f32 %v959_v36, %v978_v38  ;;  %1079 = vmatpush.msrb.mxu3 %v978_v38 }
  0x57   : > { %732 = vmatmul.f32.vlgmr.msrb.gmra.mxu1 %v2271_v18  ;;  %979 = vmatpush.msrb.mxu0 %v978_v38 }
  0x58   : > { %839 = vmatpush.msra.mxu1 %v2274_v20  ;;  %v1009_v42 = vand.u32 4294901760, %v1008_v40  ;;  %1050 = vmatpush.msrb.mxu2 %v1008_v40 }
  0x59   : > { %872 = vmatmul.f32.vlgmr.msra.gmra.mxu2 %v758_v30  ;;  %895 = vmatmul.f32.vlgmr.msra.gmra.mxu3 %v758_v30 }
  0x5a   : > { %841 = vmatpush.msra.mxu1 %v2276_v21 }
  0x5d   : > { %820 = vmatmul.f32.vlgmr.msra.gmra.mxu0 %v759_v37  ;;  %v958_v37 = vld [vmem:[%s2400_s6 + $0x10] sm:$0xff] }
  0x5e   : > { %v980_v39 = vand.u32 4294901760, %v958_v37 }
  0x5f   : > { %845 = vmatmul.f32.vlgmr.msra.gmra.mxu1 %v760_v44  ;;  %v1010_v44 = vsub.f32 %v1008_v40, %v1009_v42 }
  0x60   : > { %v1014_v41 = vsub.f32 %v958_v37, %v980_v39  ;;  %1081 = vmatpush.msrb.mxu3 %v980_v39  ;;  %981 = vmatpush.msrb.mxu0 %v980_v39 }
  0x61   : > { %v1011_v46 = vand.u32 4294901760, %v1010_v44 }
  0x62   : > { %v1015_v43 = vand.u32 4294901760, %v1014_v41  ;;  %1053 = vmatpush.msrb.mxu2 %v1014_v41  ;;  %1083 = vmatpush.msrb.mxu3 %v982_v51 }
  0x63   : > { %1012 = vmatpush.msrb.mxu1 %v1011_v46  ;;  %983 = vmatpush.msrb.mxu0 %v982_v51 }
  0x64   : > { %v1016_v45 = vsub.f32 %v1014_v41, %v1015_v43 }
  0x66   : > { %v1017_v47 = vand.u32 4294901760, %v1016_v45 }
  0x68   : > { %1018 = vmatpush.msrb.mxu1 %v1017_v47 }
  0xca   : > { %v577_v52 = vpop.f32.mrf.mxu0 }
  0xcc   : > { %v618_v53 = vpop.f32.mrf.mxu1  ;;  %v648_v54 = vpop.f32.mrf.mxu2 }
  0xcd   : > { %v619_v55 = vadd.f32 %v618_v53, %v577_v52  ;;  %v675_v56 = vpop.f32.mrf.mxu3  ;;  %v956_v52 = vld [vmem:[%s2400_s6] sm:$0xff]  ;;  %v1020_v53 = vsub.f32 %v957_v50, %v982_v51  ;;  %v2059_v50 = vmov 3  }
  0xce   : > { %1761 = vset.pattern.permute.xlu0 %v2059_v50 }
  0xcf   : > { %v649_v57 = vadd.f32 %v648_v54, %v619_v55  ;;  %v984_v54 = vand.u32 4294901760, %v956_v52  ;;  %v1021_v55 = vand.u32 4294901760, %v1020_v53  ;;  %1056 = vmatpush.msrb.mxu2 %v1020_v53 }
  0xd1   : > { %v676_v59 = vadd.f32 %v675_v56, %v649_v57  ;;  %v1026_v56 = vsub.f32 %v956_v52, %v984_v54  ;;  %1085 = vmatpush.msrb.mxu3 %v984_v54  ;;  %985 = vmatpush.msrb.mxu0 %v984_v54  ;;  %v1022_v57 = vsub.f32 %v1020_v53, %v1021_v55 }
  0xd2   : > { %v708_v58 = vpop.f32.mrf.mxu0 }
  0xd3   : > { %v709_v60 = vadd.f32 %v708_v58, %v676_v59  ;;  %v1027_v58 = vand.u32 4294901760, %v1026_v56  ;;  %1059 = vmatpush.msrb.mxu2 %v1026_v56  ;;  %1108 = vmatpush.msra.mxu0 %v1009_v42  ;;  %v1179_v59 = vld [vmem:[#allocation10 + $0x18] sm:$0xff] }
  0xd4   : > { %v733_v61 = vpop.f32.mrf.mxu1  ;;  %v764_v62 = vpop.f32.mrf.mxu2 }
  0xd5   : > { %v734_v63 = vadd.f32 %v733_v61, %v709_v60  ;;  %v795_v0 = vpop.f32.mrf.mxu3  ;;  %v1023_v60 = vand.u32 4294901760, %v1022_v57  ;;  %v1028_v61 = vsub.f32 %v1026_v56, %v1027_v58  ;;  %1112 = vmatpush.msra.mxu0 %v1015_v43 }
  0xd7   : > { %v765_v1 = vadd.f32 %v764_v62, %v734_v63  ;;  %v1196_v62 = vand.u32 4294901760, %v1179_v59  ;;  %v1178_v63 = vld [vmem:[#allocation10 + $0x10] sm:$0xff]  ;;  %1024 = vmatpush.msrb.mxu1 %v1023_v60  ;;  %1116 = vmatpush.msra.mxu0 %v1021_v55 }
  0xd9   : > { %v796_v3 = vadd.f32 %v795_v0, %v765_v1  ;;  %v1029_v0 = vand.u32 4294901760, %v1028_v61  ;;  %1197 = vmatpush.msra.mxu2 %v1196_v62  ;;  %v1226_v1 = vsub.f32 %v1179_v59, %v1196_v62  ;;  %1120 = vmatpush.msra.mxu0 %v1027_v58 }
  0xda   : > { %v821_v2 = vpop.f32.mrf.mxu0 }
  0xdb   : > { %v822_v4 = vadd.f32 %v821_v2, %v796_v3  ;;  %v1198_v2 = vand.u32 4294901760, %v1178_v63  ;;  %v1177_v3 = vld [vmem:[#allocation10 + $0x8] sm:$0xff]  ;;  %1030 = vmatpush.msrb.mxu1 %v1029_v0  ;;  %v2061_v0 = vmov 0  }
  0xdc   : > { %v846_v5 = vpop.f32.mrf.mxu1  ;;  %v873_v6 = vpop.f32.mrf.mxu2 }
  0xdd   : > { %v847_v7 = vadd.f32 %v846_v5, %v822_v4  ;;  %v896_v8 = vpop.f32.mrf.mxu3  ;;  %1199 = vmatpush.msra.mxu2 %v1198_v2  ;;  %v1227_v4 = vand.u32 4294901760, %v1226_v1  ;;  %v1200_v5 = vand.u32 4294901760, %v1177_v3  ;;  %1139 = vmatpush.msra.mxu1 %v978_v38 }
  0xdf   : > { %v874_v9 = vadd.f32 %v873_v6, %v847_v7  ;;  %v1232_v6 = vsub.f32 %v1178_v63, %v1198_v2  ;;  %v1176_v7 = vld [vmem:[#allocation10] sm:$0xff]  ;;  %1201 = vmatpush.msra.mxu2 %v1200_v5  ;;  %1141 = vmatpush.msra.mxu1 %v980_v39  ;;  %v2060_v63 = vmov 2  }
  0xe1   : > { %v897_v11 = vadd.f32 %v896_v8, %v874_v9  ;;  %v1228_v8 = vsub.f32 %v1226_v1, %v1227_v4  ;;  %v1233_v9 = vand.u32 4294901760, %v1232_v6  ;;  %1143 = vmatpush.msra.mxu1 %v982_v51 }
  0xe3   : > { %v903_v12 = vadd.f32 %v1762_v10, %v897_v11  ;;  %v1202_v10 = vand.u32 4294901760, %v1176_v7  ;;  %v1238_v11 = vsub.f32 %v1177_v3, %v1200_v5  ;;  %1145 = vmatpush.msra.mxu1 %v984_v54 }
  0xe5   : > { %1765 = vtanh.f32 %v903_v12  ;;  %v904_v15 = vsub.f32 0.0, %v903_v12  ;;  %v1229_v12 = vand.u32 4294901760, %v1228_v8  ;;  %1203 = vmatpush.msra.mxu2 %v1202_v10 }
  0xe7   : > { %v905_v16 = vmul.f32 1.442695, %v904_v15  ;;  %v1244_v15 = vsub.f32 %v1176_v7, %v1202_v10  ;;  %1230 = vmatpush.msra.mxu3 %v1229_v12 }
  0xe9   : > { %1767 = vpow2.f32 %v905_v16 }
  0xeb   : > { %v1766_v13 = vpop.eup %1765 }
  0xec   : > { %930 = vrot.lane.b32.xlu0 %v1766_v13, %s2055_s27  ;;  %v1234_v13 = vsub.f32 %v1232_v6, %v1233_v9 }
  0xee   : > { %v1235_v16 = vand.u32 4294901760, %v1234_v13 }
  0xef   : > { %v1768_v17 = vpop.eup %1767 }
  0xf0   : > { %v907_v18 = vadd.f32 1.0, %v1768_v17  ;;  %1236 = vmatpush.msra.mxu3 %v1235_v16 }
  0xf2   : > { %1769 = vrcp.f32 %v907_v18  ;;  %v919_v24 = vand.u32 2147483648, %v907_v18  ;;  %vm913_vm4 = vweird.f32 %v907_v18  ;;  %v917_v25 = vand.u32 2147483647, %v907_v18 }
  0xf4   : > { %925 = vrot.lane.b32.xlu0 %v540_v14, %s2056_s29  ;;  %v920_v27 = vor.u32 1.1754944e-38, %v919_v24  ;;  %vm918_vm6 = vcmp.eq.f32.partialorder %v917_v25, 8.507059e+37  ;;  %v1239_v14 = vand.u32 4294901760, %v1238_v11 }
  0xf6   : > { %v1240_v17 = vsub.f32 %v1238_v11, %v1239_v14 }
  0xf8   : > { %v1770_v19 = vpop.eup %1769 }
  0xf9   : > { %v909_v20 = vmul.f32 %v1770_v19, %v907_v18  ;;  %vm914_vm3 = vweird.f32 %v1770_v19  ;;  %v1245_v18 = vand.u32 4294901760, %v1244_v15 }
  0xfa   : > { %vm915_vm5 = vmor %vm913_vm4, %vm914_vm3 }
  0xfb   : > { %v910_v21 = vsub.f32 1.0, %v909_v20  ;;  %v1246_v20 = vsub.f32 %v1244_v15, %v1245_v18 }
  0xfd   : > { %v911_v22 = vmul.f32 %v1770_v19, %v910_v21  ;;  %v1247_v21 = vand.u32 4294901760, %v1246_v20 }
  0xff   : > { %v912_v23 = vadd.f32 %v1770_v19, %v911_v22 }
 0x101   : > { %v916_v26 = vsel %vm915_vm5, %v1770_v19, %v912_v23  ;;  %v1241_v19 = vand.u32 4294901760, %v1240_v17 }
 0x102   : > { %v921_v29 = vsel %vm918_vm6, %v920_v27, %v916_v26 }
 0x103   : > { %1242 = vmatpush.msra.mxu3 %v1241_v19 }
 0x105   : > { %1248 = vmatpush.msra.mxu3 %v1247_v21 }
 0x15e   : > { %v931_v28 = vpop.permute.xlu0 %930 }
 0x15f   : > { %v933_v30 = vmul.f32 %v931_v28, %v921_v29 }
 0x161   : > { %935 = vrot.lane.b32.xlu1 %v933_v30, %s2056_s29 }
 0x166   : > { %v926_v31 = vpop.permute.xlu0 %925 }
 0x167   : > { %v928_v32 = vmul.f32 %v926_v31, %v921_v29 }
 0x1d3   : > { %v936_v33 = vpop.permute.xlu1 %935 }
 0x1d4   : > { %v2307_v34 = vadd.f32 %v936_v33, %v928_v32 }
 0x1d6   : > { %1771 = vtanh.f32 %v2307_v34 }
 0x1dc   : > { %v1772_v35 = vpop.eup %1771 }
 0x1dd   : > { %941 = vrot.lane.b32.xlu1 %v1772_v35, %s2055_s27  ;;  %s2062_s27 = smov 112  }
 0x24f   : > { %v942_v48 = vpop.permute.xlu1 %941 }
 0x250   : > { %v944_v49 = vmul.f32 %v942_v48, %v921_v29  ;;  %v1763_v29 = vld [vmem:[%s2401_s7] ss:$0 sm:$0xff] }
 0x252   : > { %952 = vrot.lane.b32.xlu2 %v944_v49, %s2056_s29  ;;  %v2058_v49 = vmov 1   ;;  %s2063_s29 = smov [#allocation13]  }
 0x253   : > { %1757 = vset.pattern.permute.xlu1 %v2058_v49  ;;  %s1438_s15 = sshll.u32 %s2063_s29, 4  ;;  %s2436_s29 = sld [smem:[#allocation30_spill]]  ;;  %s1439_s15 = int_to_ptr.vmem [resolvable:$true] %s1438_s15 }
 0x259   : > { %s1973_s26 = scalar_lea.hbm %s2436_s29, 32 }
 0x2ac   : > { %v953_v22 = vpop.permute.xlu2 %952 }
 0x2ad   : > { %955 = vst.msk [vmem:[#allocation2] sm:$0xf] %vm949_vm7, %v953_v22  ;;  %v964_v23 = vsel %vm547_vm1, %v953_v22, 0 }
 0x2ae   : > { %v986_v24 = vand.u32 4294901760, %v964_v23  ;;  %1408 = vst.msk [vmem:[#allocation13] sm:$0xf] %vm949_vm7, %v953_v22 }
 0x2af   : > { %1654 = dma.vmem_to_hbm [thread:$0]  (%p2167_p2), %s1439_s15, 64, %s1441_s28, [#allocation14]  }
 0x2b0   : > { %v987_v25 = vsub.f32 %v964_v23, %v986_v24  ;;  %1032 = vmatmul.f32.vlgmr.msrb.gmra.mxu1 %v986_v24 }
 0x2b1   : > { %1297 = vmatpush.msrb.mxu1 %v1196_v62 }
 0x2b2   : > { %1062 = vmatmul.f32.vlgmr.msrb.gmra.mxu2 %v987_v25  ;;  %v988_v26 = vand.u32 4294901760, %v987_v25 }
 0x2b3   : > { %1299 = vmatpush.msrb.mxu1 %v1198_v2  ;;  %1326 = vmatpush.msrb.mxu2 %v1227_v4 }
 0x2b4   : > { %1089 = vmatmul.f32.vlgmr.msrb.gmra.mxu3 %v988_v26  ;;  %v989_v27 = vsub.f32 %v987_v25, %v988_v26 }
 0x2b5   : > { %1301 = vmatpush.msrb.mxu1 %v1200_v5  ;;  %1330 = vmatpush.msrb.mxu2 %v1233_v9 }
 0x2b6   : > { %v990_v28 = vand.u32 4294901760, %v989_v27  ;;  %1357 = vmatpush.msrb.mxu3 %v1196_v62 }
 0x2b7   : > { %1303 = vmatpush.msrb.mxu1 %v1202_v10  ;;  %1334 = vmatpush.msrb.mxu2 %v1239_v14 }
 0x2b8   : > { %991 = vmatmul.f32.vlgmr.msrb.gmra.mxu0 %v990_v28  ;;  %1147 = vmatmul.f32.vlgmr.msra.gmra.mxu1 %v986_v24 }
 0x2b9   : > { %1359 = vmatpush.msrb.mxu3 %v1198_v2  ;;  %1268 = vmatpush.msrb.mxu0 %v1226_v1  ;;  %v1764_v1 = vld [vmem:[%s2403_s9] ss:$0 sm:$0xff] }
 0x2ba   : > { %1209 = vmatmul.f32.vlgmr.msra.gmra.mxu2 %v990_v28 }
 0x2bb   : > { %1338 = vmatpush.msrb.mxu2 %v1245_v18  ;;  %1361 = vmatpush.msrb.mxu3 %v1200_v5 }
 0x2bc   : > { %1250 = vmatmul.f32.vlgmr.msra.gmra.mxu3 %v986_v24  ;;  %1271 = vmatpush.msrb.mxu0 %v1232_v6 }
 0x2bd   : > { %1363 = vmatpush.msrb.mxu3 %v1202_v10 }
 0x2be   : > { %1274 = vmatpush.msrb.mxu0 %v1238_v11 }
 0x2c0   : > { %1122 = vmatmul.f32.vlgmr.msra.gmra.mxu0 %v986_v24  ;;  %1307 = vmatmul.f32.vlgmr.msrb.gmra.mxu1 %v988_v26 }
 0x2c1   : > { %1277 = vmatpush.msrb.mxu0 %v1244_v15 }
 0x2c2   : > { %1340 = vmatmul.f32.vlgmr.msrb.gmra.mxu2 %v986_v24 }
 0x2c4   : > { %1365 = vmatmul.f32.vlgmr.msrb.gmra.mxu3 %v986_v24 }
 0x2c8   : > { %1280 = vmatmul.f32.vlgmr.msrb.gmra.mxu0 %v987_v25 }
 0x32d   : > { %v1033_v30 = vpop.f32.mrf.mxu1 }
 0x335   : > { %v992_v31 = vpop.f32.mrf.mxu0  ;;  %v1063_v35 = vpop.f32.mrf.mxu2 }
 0x336   : > { %v993_v32 = vadd.f32 %v1763_v29, %v992_v31  ;;  %v1148_v41 = vpop.f32.mrf.mxu1 }
 0x337   : > { %v1090_v37 = vpop.f32.mrf.mxu3 }
 0x338   : > { %v1034_v33 = vadd.f32 %v1033_v30, %v993_v32 }
 0x33a   : > { %v1064_v36 = vadd.f32 %v1063_v35, %v1034_v33 }
 0x33c   : > { %v1091_v38 = vadd.f32 %v1090_v37, %v1064_v36 }
 0x33d   : > { %v1123_v39 = vpop.f32.mrf.mxu0  ;;  %v1210_v2 = vpop.f32.mrf.mxu2 }
 0x33e   : > { %v1124_v40 = vadd.f32 %v1123_v39, %v1091_v38  ;;  %v1211_v3 = vadd.f32 %v1764_v1, %v1210_v2  ;;  %v1308_v8 = vpop.f32.mrf.mxu1 }
 0x33f   : > { %v1251_v4 = vpop.f32.mrf.mxu3 }
 0x340   : > { %v1149_v42 = vadd.f32 %v1148_v41, %v1124_v40  ;;  %v1252_v6 = vadd.f32 %v1251_v4, %v1211_v3 }
 0x342   : > { %v1152_v43 = vsel %vm1151_vm8, %v1149_v42, -inf }
 0x343   : > { %1153 = vmax.xlane.f32.xlu2 %v1152_v43 }
 0x345   : > { %v1281_v5 = vpop.f32.mrf.mxu0  ;;  %v1341_v10 = vpop.f32.mrf.mxu2 }
 0x346   : > { %v1282_v7 = vadd.f32 %v1281_v5, %v1252_v6 }
 0x347   : > { %v1366_v12 = vpop.f32.mrf.mxu3 }
 0x348   : > { %v1309_v9 = vadd.f32 %v1308_v8, %v1282_v7 }
 0x34a   : > { %v1342_v11 = vadd.f32 %v1341_v10, %v1309_v9 }
 0x34c   : > { %v1367_v13 = vadd.f32 %v1366_v12, %v1342_v11 }
 0x3b6   : > { %v1154_v44 = vpop.xlane.xlu2 %1153 }
 0x3b7   : > { %v1155_v45 = vsub.f32 %v1149_v42, %v1154_v44 }
 0x3b9   : > { %v1156_v46 = vmul.f32 1.442695, %v1155_v45 }
 0x3bb   : > { %1773 = vpow2.f32 %v1156_v46 }
 0x3c1   : > { %v1774_v47 = vpop.eup %1773 }
 0x3c2   : > { %v1158_v48 = vsel %vm1151_vm8, %v1774_v47, 0.0 }
 0x3c3   : > { %1159 = vadd.xlane.f32.xlu0 %v1158_v48 }
 0x3d7   : > { %946 = vrot.lane.b32.xlu0 %v2307_v34, %s2057_s17 }
 0x436   : > { %v1160_v51 = vpop.xlane.xlu0 %1159 }
 0x437   : > { %1775 = vrcp.f32 %v1160_v51  ;;  %v1172_v55 = vand.u32 2147483648, %v1160_v51  ;;  %v1170_v57 = vand.u32 2147483647, %v1160_v51  ;;  %vm1166_vm10 = vweird.f32 %v1160_v51 }
 0x439   : > { %v1173_v59 = vor.u32 1.1754944e-38, %v1172_v55  ;;  %vm1171_vm12 = vcmp.eq.f32.partialorder %v1170_v57, 8.507059e+37 }
 0x43d   : > { %v1776_v52 = vpop.eup %1775 }
 0x43e   : > { %v1162_v53 = vmul.f32 %v1776_v52, %v1160_v51  ;;  %vm1167_vm9 = vweird.f32 %v1776_v52 }
 0x43f   : > { %vm1168_vm11 = vmor %vm1166_vm10, %vm1167_vm9 }
 0x440   : > { %v1163_v54 = vsub.f32 1.0, %v1162_v53 }
 0x442   : > { %v1164_v56 = vmul.f32 %v1776_v52, %v1163_v54 }
 0x444   : > { %v1165_v58 = vadd.f32 %v1776_v52, %v1164_v56 }
 0x446   : > { %v1169_v60 = vsel %vm1168_vm11, %v1776_v52, %v1165_v58 }
 0x447   : > { %v1174_v34 = vsel %vm1171_vm12, %v1173_v59, %v1169_v60 }
 0x448   : > { %v1175_v61 = vmul.f32 %v1774_v47, %v1174_v34 }
 0x449   : > { %v947_v62 = vpop.permute.xlu0 %946 }
 0x44a   : > { %950 = vst.msk [vmem:[#allocation3] sm:$0xf] %vm949_vm7, %v947_v62  ;;  %1377 = vperm.xlu1 %1757, %v1175_v61  }
 0x44b   : > { %1409 = vst.msk [vmem:[#allocation15] sm:$0xf] %vm949_vm7, %v947_v62 }
 0x44c   : > { %1656 = dma.vmem_to_hbm [thread:$0]  (%p2167_p2), %s1453_s16, 64, %s1455_s25, [#allocation14]  }
 0x452   : > { %1758 = vset.pattern.permute.xlu1 %v2060_v63 }
 0x453   : > { %1387 = vperm.xlu1 %1758, %v1175_v61  }
 0x45b   : > { %1759 = vset.pattern.permute.xlu1 %v2059_v50 }
 0x45c   : > { %1397 = vperm.xlu1 %1759, %v1175_v61  }
 0x464   : > { %1760 = vset.pattern.permute.xlu1 %v2061_v0 }
 0x465   : > { %1371 = vperm.xlu1 %1760, %v1175_v61  }
 0x4bc   : > { %v1378_v14 = vpop.permute.xlu1 %1377 }
 0x4bd   : > { %v1380_v15 = vmul.f32 %v1378_v14, %v1367_v13 }
 0x4bf   : > { %1382 = vrot.lane.b32.xlu1 %v1380_v15, %s2062_s27 }
 0x4c5   : > { %v1388_v16 = vpop.permute.xlu1 %1387 }
 0x4c6   : > { %v1390_v17 = vmul.f32 %v1388_v16, %v1367_v13 }
 0x4c8   : > { %1392 = vrot.lane.b32.xlu2 %v1390_v17, %s2057_s17  ;;  %s1629_s17 = sshll.u32 %s2039_s24, 2  ;;  %s1411_s24 = scalar_lea.sflag [#allocation6], %s511_s3 }
 0x4c9   : > { %s1422_s15 = scalar_lea.hbm %s2436_s29, %s1629_s17 }
 0x4ca   : > { %s1426_s28 = sshll.u32 %s1422_s15, 4  ;;  %s1427_s28 = int_to_ptr.hbm [resolvable:$true] %s1426_s28 }
 0x4cb   : > { %s1967_s12 = sshra.s32 %s1427_s28, 4  ;;  %s1968_s12 = int_to_ptr.hbm [resolvable:$true] %s1967_s12 }
 0x4cc   : > { %s1969_s21 = scalar_lea.hbm %s1968_s12, 4  ;;  %p1974_p7 = scmp.lt.s32.totalorder %s1968_s12, %s2436_s29 }
 0x4cd   : > { %p1970_p3 = scmp.ne.s32.totalorder %s1968_s12, %s1969_s21  ;;  %p1975_p9 = scmp.lt.s32.totalorder %s1973_s26, %s1969_s21 }
 0x4ce   : > { %v1398_v18 = vpop.permute.xlu1 %1397 }
 0x4cf   : > { %v1400_v19 = vmul.f32 %v1398_v18, %v1367_v13  ;;  %p1971_p5 = pnand %p1970_p3, %p2177_p4  ;;  %p1976_p10 = por %p1975_p9, %p1974_p7 }
 0x4d1   : > { %1402 = vrot.lane.b32.xlu1 %v1400_v19, %s2065_s18  ;;  %p1972_p6 = pneg %p1971_p5 }
 0x4d3   : > { %p1977_p11 = pnand %p1976_p10, %p1972_p6 }
 0x4d7   : > { %v1372_v20 = vpop.permute.xlu1 %1371 }
 0x4d8   : > { %v1374_v22 = vmul.f32 %v1372_v20, %v1367_v13 }
 0x522   : > { %v1393_v24 = vpop.permute.xlu2 %1392 }
 0x531   : > { %v1383_v21 = vpop.permute.xlu1 %1382 }
 0x532   : > { %v1385_v23 = vadd.f32 %v1383_v21, %v1374_v22 }
 0x534   : > { %v1395_v25 = vadd.f32 %v1393_v24, %v1385_v23 }
 0x543   : > { %v1403_v26 = vpop.permute.xlu1 %1402 }
 0x544   : > { %v1405_v27 = vadd.f32 %v1403_v26, %v1395_v25 }
 0x546   : > { %1407 = vst.msk [vmem:[%s513_s14] sm:$0xf] %vm1406_vm13, %v1405_v27 }
 0x547   : > { %1980 = shalt.err (!%p1977_p11)
}
 0x548   : > { %1652 = dma.vmem_to_hbm [thread:$0]  (%p2177_p4), %s1425_s20, 64, %s1427_s28, %s1411_s24  }
 0x549   : > { %2018 = dma.done.wait (%p2167_p2), [#allocation14], 128  }
 0x54a   : > { %2020 = vsyncadd (%p2167_p2), [#allocation14], 4294967168 }
 0x54b PF: > { %s2438_s3 = sld [smem:[#allocation24_spill]] }
 0x54c   : > { %s2439_s10 = sld [smem:[#allocation21_spill]] }
 0x551   : > { %p1691_p12 = scmp.ge.s32.totalorder %s2438_s3, 2 }
 0x552   : > { %s1476_s17 = sand.u32 1, %s2439_s10  }
 0x553   : > { %p1676_p13 = pnand %p1691_p12, %p2184_p8  ;;  %s1477_s19 = scalar_lea.sflag [#allocation6], %s1476_s17 }
 0x555   : > { %p1677_p0 = pneg %p1676_p13 }
 0x557   : > { %2022 = dma.done.wait (%p1677_p0), %s1477_s19, 64  }
 0x558   : > { %2024 = vsyncadd (%p1677_p0), %s1477_s19, 4294967232  ;;  %s30_s26 = sadd.s32 1, %s2438_s3   ;;  %s2441_s27 = sld [smem:[#allocation22_spill]] }
 0x559   : > { %p27_p4 = scmp.ge.s32.totalorder %s30_s26, 10   ;;  %s2442_s23 = sld [smem:[#allocation28_spill]] }
 0x55a   : > { %s2443_s24 = sld [smem:[#allocation23_spill]]  ;;  %s2445_s21 = smov %s2031_s22 }
 0x55b   : > { %s2444_s25 = sld [smem:[#allocation25_spill]]  ;;  %29 = sbr.rel (!%p27_p4) target bundleno = 12 (0xc), region = 138 }
 0x55e   : > { %s2446_s22 = smov %s2441_s27 }
 0x560   :  { %1483 = vsyncpa [#allocation5], 1 }
 0x561   :  { %1485 = vsyncpa [#allocation5 + $0x1], 1 }
 0x562   :  { %1486 = vsyncpa [#allocation8], 1 }
 0x563   :  { %1487 = vsyncpa [#allocation11], 1 }
 0x564   :  { %1488 = vsyncpa [#allocation6], 1 }
 0x565   :  { %1490 = vsyncpa [#allocation6 + $0x1], 1 }
 0x566   :  { %1491 = vsyncpa [#allocation14], 1 }

</bundles_post_ra>
